<compile_context>
chip_gen: v6e
topology: v6e:2x2x1
jax: 0.10.0
libtpu: 0.0.40
codegen_flags: <defaults>
</compile_context>

<pallas_src>
import math

import jax
import jax.numpy as jnp
from jax.experimental import pallas as pl
from jax.experimental.pallas import tpu as pltpu

IN_DIM = 2
HID = 512
OUT_DIM = 3
OUT_PAD = 128             # lane-padded width used for the layer-3 MXU matmul
MAX_TILE_B = 512          # batch tile (sweepable 512-1024; 512 safe on v5e)
MXU_DTYPE = jnp.bfloat16  # matmul input dtype (accumulation stays f32)
VMEM_LIMIT = 32 * 1024 * 1024


def _round_up(n, m):
    return ((n + m - 1) // m) * m


def _choose_tile_b(B):
    """Multiple of 16; ~ceil(B/2) so big batches give >=2 grid steps (v7x 2 TCs)."""
    half = _round_up((B + 1) // 2, 16)
    return max(16, min(MAX_TILE_B, half))


def _mlp_kernel(x_ref, w1_ref, b1_ref, w2_ref, b2_ref, w3_ref, b3_ref, o_ref):
    # ---- layer 1: (TB, 2) x (2, 512). K=2 is degenerate on the MXU, so compute
    # it on the VPU as an outer-product sum; f32 elementwise (v5e-safe).
    x = x_ref[...]                                 # (TB, 2) f32
    w1 = w1_ref[...]                               # (2, HID) f32
    h1 = x[:, 0:1] * w1[0:1, :] + x[:, 1:2] * w1[1:2, :] + b1_ref[...]
    h1 = jnp.maximum(h1, 0.0)

    # ---- layer 2: (TB, 512) @ (512, 512) on the MXU, bf16 in / f32 accumulate.
    h2 = jnp.dot(h1.astype(MXU_DTYPE), w2_ref[...],
                 preferred_element_type=jnp.float32)
    h2 = jnp.maximum(h2 + b2_ref[...], 0.0)

    # ---- layer 3: (TB, 512) @ (512, 128) (lane-padded) on the MXU; only the
    # first OUT_DIM columns are real logits and only those are stored.
    logits = jnp.dot(h2.astype(MXU_DTYPE), w3_ref[...],
                     preferred_element_type=jnp.float32)
    logits = logits + b3_ref[...]
    o_ref[...] = logits[:, :OUT_DIM].astype(o_ref.dtype)


def prepare_params(w1, b1, w2, b2, w3, b3):
    """One-time prep (hoisted out of the forward): MXU dtypes + lane padding."""
    w2_mxu = w2.astype(MXU_DTYPE)
    w3_mxu = jnp.zeros((HID, OUT_PAD), MXU_DTYPE).at[:, :OUT_DIM].set(
        w3.astype(MXU_DTYPE))
    b3_pad = jnp.zeros((1, OUT_PAD), jnp.float32).at[:, :OUT_DIM].set(b3)
    return (w1.astype(jnp.float32), b1.astype(jnp.float32),
            w2_mxu, b2.astype(jnp.float32), w3_mxu, b3_pad)


@jax.jit
def e3_forward(x, w1, b1, w2_mxu, b2, w3_mxu, b3_pad):
    """x: (B, 2) f32; params already prepared by prepare_params(); -> (B, 3) f32."""
    B = x.shape[0]
    tile_b = _choose_tile_b(B)
    grid = (pl.cdiv(B, tile_b),)

    full = lambda shape: pl.BlockSpec(shape, lambda i: (0,) * len(shape))

    return pl.pallas_call(
        _mlp_kernel,
        out_shape=jax.ShapeDtypeStruct((B, OUT_DIM), jnp.float32),
        grid_spec=pltpu.PrefetchScalarGridSpec(
            num_scalar_prefetch=0,
            grid=grid,
            in_specs=[
                pl.BlockSpec((tile_b, IN_DIM), lambda i: (i, 0)),  # x tile
                full((IN_DIM, HID)),                               # w1 (f32)
                full((1, HID)),                                    # b1 (f32)
                full((HID, HID)),                                  # w2 (bf16)
                full((1, HID)),                                    # b2 (f32)
                full((HID, OUT_PAD)),                              # w3 (bf16, padded)
                full((1, OUT_PAD)),                                # b3 (f32, padded)
            ],
            out_specs=pl.BlockSpec((tile_b, OUT_DIM), lambda i: (i, 0)),
        ),
        compiler_params=pltpu.CompilerParams(
            dimension_semantics=("parallel",),
            vmem_limit_bytes=VMEM_LIMIT),
    )(x, w1, b1, w2_mxu, b2, w3_mxu, b3_pad)


def init_params(key):
    """Deterministic init mirroring reset_parameters(init=2):
       weight ~ Normal(0, 0.1), bias ~ Uniform(-1/sqrt(fan_in), 1/sqrt(fan_in))."""
    ks = jax.random.split(key, 6)

    def layer(kw, kb, fan_in, fan_out):
        w = 0.1 * jax.random.normal(kw, (fan_in, fan_out), dtype=jnp.float32)
        bound = 1.0 / math.sqrt(fan_in)
        b = jax.random.uniform(kb, (1, fan_out), dtype=jnp.float32,
                               minval=-bound, maxval=bound)
        return w, b

    w1, b1 = layer(ks[0], ks[1], IN_DIM, HID)
    w2, b2 = layer(ks[2], ks[3], HID, HID)
    w3, b3 = layer(ks[4], ks[5], HID, OUT_DIM)
    return w1, b1, w2, b2, w3, b3


def _reference(x, params):
    w1, b1, w2, b2, w3, b3 = params
    h = jnp.maximum(x @ w1 + b1, 0.0)
    h = jnp.maximum(h @ w2 + b2, 0.0)
    return h @ w3 + b3


if __name__ == "__main__":
    key = jax.random.PRNGKey(0)
    k_x, k_x2, k_p = jax.random.split(key, 3)
    params = init_params(k_p)
    dev_params = prepare_params(*params)   # hoisted one-time weight prep

    # small-batch check (single grid step, partial rows masked in the tile)
    batch = 8
    x = jax.random.normal(k_x, (batch, IN_DIM), dtype=jnp.float32)
    out = e3_forward(x, *dev_params)
    jax.block_until_ready(out)
    ref = _reference(x, params)
    assert out.shape == (batch, OUT_DIM)
    # bf16 MXU inputs (f32 accumulate) -> loosened tolerance vs the f32 reference
    assert jnp.allclose(out, ref, atol=5e-2, rtol=5e-2)

    # larger batch exercising multiple grid steps and the partial tail block
    batch2 = 300
    x2 = jax.random.normal(k_x2, (batch2, IN_DIM), dtype=jnp.float32)
    out2 = e3_forward(x2, *dev_params)
    jax.block_until_ready(out2)
    ref2 = _reference(x2, params)
    assert out2.shape == (batch2, OUT_DIM)
    assert jnp.allclose(out2, ref2, atol=5e-2, rtol=5e-2)

    print("KERNEL_OK")
</pallas_src>

<mosaic_0001>
module attributes {stable_mosaic.version = 11 : i64} {
  func.func @_mlp_kernel(%arg0: i32, %arg1: memref<16x2xf32, #tpu.memory_space<vmem>>, %arg2: memref<2x512xf32, #tpu.memory_space<vmem>>, %arg3: memref<1x512xf32, #tpu.memory_space<vmem>>, %arg4: memref<512x512xbf16, #tpu.memory_space<vmem>>, %arg5: memref<1x512xf32, #tpu.memory_space<vmem>>, %arg6: memref<512x128xbf16, #tpu.memory_space<vmem>>, %arg7: memref<1x128xf32, #tpu.memory_space<vmem>>, %arg8: memref<16x3xf32, #tpu.memory_space<vmem>>) attributes {dimension_semantics = [#tpu.dimension_semantics<parallel>], iteration_bounds = array<i64: 1>, scalar_prefetch = 0 : i64, scratch_operands = 0 : i64, tpu.core_type = #tpu.core_type<tc>, window_params = [{transform_indices = @transform_0, window_bounds = array<i64: 16, 2>}, {pipeline_mode = #tpu.pipeline_mode<synchronous>, transform_indices = @transform_1, window_bounds = array<i64: 2, 512>}, {pipeline_mode = #tpu.pipeline_mode<synchronous>, transform_indices = @transform_2, window_bounds = array<i64: 1, 512>}, {pipeline_mode = #tpu.pipeline_mode<synchronous>, transform_indices = @transform_3, window_bounds = array<i64: 512, 512>}, {pipeline_mode = #tpu.pipeline_mode<synchronous>, transform_indices = @transform_4, window_bounds = array<i64: 1, 512>}, {pipeline_mode = #tpu.pipeline_mode<synchronous>, transform_indices = @transform_5, window_bounds = array<i64: 512, 128>}, {pipeline_mode = #tpu.pipeline_mode<synchronous>, transform_indices = @transform_6, window_bounds = array<i64: 1, 128>}, {transform_indices = @transform_7, window_bounds = array<i64: 16, 3>}]} {
    %c0 = arith.constant 0 : index
    %c0_0 = arith.constant 0 : index
    %0 = vector.load %arg1[%c0, %c0_0] : memref<16x2xf32, #tpu.memory_space<vmem>>, vector<16x2xf32>
    %c0_1 = arith.constant 0 : index
    %c0_2 = arith.constant 0 : index
    %1 = vector.load %arg2[%c0_1, %c0_2] : memref<2x512xf32, #tpu.memory_space<vmem>>, vector<2x512xf32>
    %2 = vector.extract_strided_slice %0 {offsets = [0, 0], sizes = [16, 1], strides = [1, 1]} : vector<16x2xf32> to vector<16x1xf32>
    %3 = vector.extract_strided_slice %1 {offsets = [0, 0], sizes = [1, 512], strides = [1, 1]} : vector<2x512xf32> to vector<1x512xf32>
    %4 = vector.broadcast %2 : vector<16x1xf32> to vector<16x512xf32>
    %5 = vector.broadcast %3 : vector<1x512xf32> to vector<16x512xf32>
    %6 = arith.mulf %4, %5 : vector<16x512xf32>
    %7 = vector.extract_strided_slice %0 {offsets = [0, 1], sizes = [16, 1], strides = [1, 1]} : vector<16x2xf32> to vector<16x1xf32>
    %8 = vector.extract_strided_slice %1 {offsets = [1, 0], sizes = [1, 512], strides = [1, 1]} : vector<2x512xf32> to vector<1x512xf32>
    %9 = vector.broadcast %7 : vector<16x1xf32> to vector<16x512xf32>
    %10 = vector.broadcast %8 : vector<1x512xf32> to vector<16x512xf32>
    %11 = arith.mulf %9, %10 : vector<16x512xf32>
    %12 = arith.addf %6, %11 : vector<16x512xf32>
    %c0_3 = arith.constant 0 : index
    %c0_4 = arith.constant 0 : index
    %13 = vector.load %arg3[%c0_3, %c0_4] : memref<1x512xf32, #tpu.memory_space<vmem>>, vector<1x512xf32>
    %14 = vector.broadcast %13 : vector<1x512xf32> to vector<16x512xf32>
    %15 = arith.addf %12, %14 : vector<16x512xf32>
    %cst = arith.constant 0.000000e+00 : f32
    %16 = vector.broadcast %cst : f32 to vector<16x512xf32>
    %17 = arith.maximumf %15, %16 : vector<16x512xf32>
    %18 = arith.truncf %17 : vector<16x512xf32> to vector<16x512xbf16>
    %c0_5 = arith.constant 0 : index
    %c0_6 = arith.constant 0 : index
    %19 = vector.load %arg4[%c0_5, %c0_6] : memref<512x512xbf16, #tpu.memory_space<vmem>>, vector<512x512xbf16>
    %cst_7 = arith.constant dense<0.000000e+00> : vector<16x512xf32>
    %20 = tpu.matmul %18, %19, %cst_7 {dimension_numbers = #tpu.dot_dimension_numbers<[1], [0], [0], [1], [0, 0, 1, 1], [], []>} : vector<16x512xbf16>, vector<512x512xbf16>, vector<16x512xf32> -> vector<16x512xf32>
    %c0_8 = arith.constant 0 : index
    %c0_9 = arith.constant 0 : index
    %21 = vector.load %arg5[%c0_8, %c0_9] : memref<1x512xf32, #tpu.memory_space<vmem>>, vector<1x512xf32>
    %22 = vector.broadcast %21 : vector<1x512xf32> to vector<16x512xf32>
    %23 = arith.addf %20, %22 : vector<16x512xf32>
    %cst_10 = arith.constant 0.000000e+00 : f32
    %24 = vector.broadcast %cst_10 : f32 to vector<16x512xf32>
    %25 = arith.maximumf %23, %24 : vector<16x512xf32>
    %26 = arith.truncf %25 : vector<16x512xf32> to vector<16x512xbf16>
    %c0_11 = arith.constant 0 : index
    %c0_12 = arith.constant 0 : index
    %27 = vector.load %arg6[%c0_11, %c0_12] : memref<512x128xbf16, #tpu.memory_space<vmem>>, vector<512x128xbf16>
    %cst_13 = arith.constant dense<0.000000e+00> : vector<16x128xf32>
    %28 = tpu.matmul %26, %27, %cst_13 {dimension_numbers = #tpu.dot_dimension_numbers<[1], [0], [0], [1], [0, 0, 1, 1], [], []>} : vector<16x512xbf16>, vector<512x128xbf16>, vector<16x128xf32> -> vector<16x128xf32>
    %c0_14 = arith.constant 0 : index
    %c0_15 = arith.constant 0 : index
    %29 = vector.load %arg7[%c0_14, %c0_15] : memref<1x128xf32, #tpu.memory_space<vmem>>, vector<1x128xf32>
    %30 = vector.broadcast %29 : vector<1x128xf32> to vector<16x128xf32>
    %31 = arith.addf %28, %30 : vector<16x128xf32>
    %32 = vector.extract_strided_slice %31 {offsets = [0, 0], sizes = [16, 3], strides = [1, 1]} : vector<16x128xf32> to vector<16x3xf32>
    %c0_16 = arith.constant 0 : index
    %c0_17 = arith.constant 0 : index
    %33 = vector.load %arg8[%c0_16, %c0_17] : memref<16x3xf32, #tpu.memory_space<vmem>>, vector<16x3xf32>
    tpu.vector_store %arg8[%c0_16, %c0_17], %32 {strides = array<i32>} : memref<16x3xf32, #tpu.memory_space<vmem>>, vector<16x3xf32>,
    return
  }
  func.func @transform_0(%arg0: i32) -> (i32, i32) {
    %c0_i32 = arith.constant 0 : i32
    %c0_i32_0 = arith.constant 0 : i32
    return %arg0, %c0_i32 : i32, i32
  }
  func.func @transform_1(%arg0: i32) -> (i32, i32) {
    %c0_i32 = arith.constant 0 : i32
    %c0_i32_0 = arith.constant 0 : i32
    %c0_i32_1 = arith.constant 0 : i32
    return %c0_i32, %c0_i32_0 : i32, i32
  }
  func.func @transform_2(%arg0: i32) -> (i32, i32) {
    %c0_i32 = arith.constant 0 : i32
    %c0_i32_0 = arith.constant 0 : i32
    %c0_i32_1 = arith.constant 0 : i32
    return %c0_i32, %c0_i32_0 : i32, i32
  }
  func.func @transform_3(%arg0: i32) -> (i32, i32) {
    %c0_i32 = arith.constant 0 : i32
    %c0_i32_0 = arith.constant 0 : i32
    %c0_i32_1 = arith.constant 0 : i32
    return %c0_i32, %c0_i32_0 : i32, i32
  }
  func.func @transform_4(%arg0: i32) -> (i32, i32) {
    %c0_i32 = arith.constant 0 : i32
    %c0_i32_0 = arith.constant 0 : i32
    %c0_i32_1 = arith.constant 0 : i32
    return %c0_i32, %c0_i32_0 : i32, i32
  }
  func.func @transform_5(%arg0: i32) -> (i32, i32) {
    %c0_i32 = arith.constant 0 : i32
    %c0_i32_0 = arith.constant 0 : i32
    %c0_i32_1 = arith.constant 0 : i32
    return %c0_i32, %c0_i32_0 : i32, i32
  }
  func.func @transform_6(%arg0: i32) -> (i32, i32) {
    %c0_i32 = arith.constant 0 : i32
    %c0_i32_0 = arith.constant 0 : i32
    %c0_i32_1 = arith.constant 0 : i32
    return %c0_i32, %c0_i32_0 : i32, i32
  }
  func.func @transform_7(%arg0: i32) -> (i32, i32) {
    %c0_i32 = arith.constant 0 : i32
    %c0_i32_0 = arith.constant 0 : i32
    return %arg0, %c0_i32 : i32, i32
  }
}

</mosaic_0001>

<bundles_post_ra>
// kernel: e3_forward.1
= control target key start
LH: loop header
LB: loop body
LE: loop exit
PB: predicated region body
PF: predicated region fallthrough
CT: control target
= control target key end

     0   :  { %12 = vsyncpa [#allocation3], 0  ;;  %s2175_s0 = inlined_call_operand.vmem [shape: f32[8,2], index: 0, kind: input, shape index: {}]   ;;  %s2176_s1 = inlined_call_operand.vmem [shape: f32[2,512], index: 1, kind: input, shape index: {}]   ;;  %s2177_s2 = inlined_call_operand.vmem [shape: f32[1,512], index: 2, kind: input, shape index: {}]   ;;  %s2178_s3 = inlined_call_operand.hbm [shape: bf16[512,512], index: 3, kind: input, shape index: {}]   ;;  %s2179_s4 = inlined_call_operand.vmem [shape: f32[1,512], index: 4, kind: input, shape index: {}]   ;;  %s2180_s5 = inlined_call_operand.hbm [shape: bf16[512,128], index: 5, kind: input, shape index: {}]   ;;  %s2181_s6 = inlined_call_operand.vmem [shape: f32[1,128], index: 6, kind: input, shape index: {}]   ;;  %s2182_s7 = inlined_call_operand.vmem [shape: f32[8,3], index: 7, kind: output, shape index: {}]  }
   0x1   :  { %13 = vsyncpa [#allocation5], 0  ;;  %s2064_s24 = smov [#allocation2]  }
   0x2   :  { %s25_s25 = sshll.u32 %s2064_s24, 4  ;;  %s26_s25 = int_to_ptr.vmem [resolvable:$true] %s25_s25 }
   0x3   :  { %s2028_s26 = scalar_lea.vmem %s26_s25, 16384  ;;  %p2033_p1 = scmp.lt.s32.totalorder %s26_s25, %s26_s25 }
   0x4   :  { %p2029_p0 = scmp.ne.s32.totalorder %s26_s25, %s2028_s26  ;;  %p2034_p2 = scmp.lt.s32.totalorder %s2028_s26, %s2028_s26 }
   0x6   :  { %p2035_p3 = por %p2034_p2, %p2033_p1 }
   0x8   :  { %p2036_p4 = pnand %p2035_p3, %p2029_p0 }
   0xa   :  { %2039 = shalt.err (!%p2036_p4)
}
   0xb   :  { %s2065_s27 = smov 256   ;;  %s2066_s28 = smov 16  }
   0xc   :  { %31 = dma.hbm_to_vmem [thread:$0]  %s2178_s3, 16384, %s26_s25, [#allocation3], %s2065_s27, %s2065_s27, %s2066_s28  }
   0xd   :  { %s2067_s8 = smov [#allocation4]  }
   0xe   :  { %s39_s9 = sshll.u32 %s2067_s8, 4  ;;  %s40_s9 = int_to_ptr.vmem [resolvable:$true] %s39_s9 }
   0xf   :  { %s2048_s10 = scalar_lea.vmem %s40_s9, 4096  ;;  %p2053_p6 = scmp.lt.s32.totalorder %s40_s9, %s40_s9 }
  0x10   :  { %p2049_p5 = scmp.ne.s32.totalorder %s40_s9, %s2048_s10  ;;  %p2054_p7 = scmp.lt.s32.totalorder %s2048_s10, %s2048_s10 }
  0x12   :  { %p2055_p8 = por %p2054_p7, %p2053_p6 }
  0x14   :  { %p2056_p9 = pnand %p2055_p8, %p2049_p5 }
  0x16   :  { %2059 = shalt.err (!%p2056_p9)
}
  0x17   :  { %s2068_s11 = smov 64   ;;  %s2069_s12 = smov 4  }
  0x18   :  { %45 = dma.hbm_to_vmem [thread:$0]  %s2180_s5, 4096, %s40_s9, [#allocation5], %s2068_s11, %s2068_s11, %s2069_s12  }
  0x19   :  { %2060 = dma.done.wait [#allocation3], 16384  }
  0x1a   :  { %2061 = vsyncadd [#allocation3], 4294950912 }
  0x1b   :  { %2062 = dma.done.wait [#allocation5], 4096  }
  0x1c   :  { %2063 = vsyncadd [#allocation5], 4294963200  ;;  %v2070_v0 = vmov 1   ;;  %v2071_v1 = vmov 0   ;;  %v55_v2 = vld [vmem:[%s2175_s0] sm:$0xff]  ;;  %v56_v3 = vld [vmem:[%s2175_s0 + $0x8] sm:$0xff] }
  0x1d   :  { %1794 = vset.pattern.permute.xlu1 %v2070_v0  ;;  %1793 = vset.pattern.permute.xlu0 %v2071_v1  ;;  %v1796_v4 = vld [vmem:[#allocation2 + $0xe4] ss:$16 sps:$4 sm:$0xff]   ;;  %v1800_v6 = vld [vmem:[#allocation2 + $0xe0] ss:$16 sps:$4 sm:$0xff]   ;;  %vm1534_vm0 = vcmask 23552  }
  0x1e   :  { %114 = vperm.xlu1 %1794, %v55_v2   ;;  %60 = vperm.xlu0 %1793, %v55_v2   ;;  %v1798_v5 = vld [vmem:[#allocation2 + $0x2e4] ss:$16 sps:$4 sm:$0xff]   ;;  %v1801_v7 = vld [vmem:[#allocation2 + $0x2e0] ss:$16 sps:$4 sm:$0xff]  }
  0x1f   :  { %1005 = vmatprep.subr.bf16.mxu0 %v1796_v4  ;;  %1048 = vmatprep.subr.bf16.mxu1 %v1798_v5  ;;  %v1802_v8 = vld [vmem:[#allocation2 + $0xc4] ss:$16 sps:$4 sm:$0xff]   ;;  %v1806_v10 = vld [vmem:[#allocation2 + $0xc0] ss:$16 sps:$4 sm:$0xff]   ;;  %v1897_v5 = vld [vmem:[#allocation2 + $0x2ec] ss:$16 sps:$4 sm:$0xff]  }
  0x20   :  { %1006 = vmatpush1.bf16.msra.mxu0 %v1800_v6  ;;  %v1804_v9 = vld [vmem:[#allocation2 + $0x2c4] ss:$16 sps:$4 sm:$0xff]   ;;  %v1807_v11 = vld [vmem:[#allocation2 + $0x2c0] ss:$16 sps:$4 sm:$0xff]   ;;  %1049 = vmatpush1.bf16.msra.mxu1 %v1801_v7  ;;  %v69_v6 = vlaneseq }
  0x21   :  { %1007 = vmatprep.subr.bf16.mxu0 %v1802_v8  ;;  %v1808_v12 = vld [vmem:[#allocation2 + $0xa4] ss:$16 sps:$4 sm:$0xff]   ;;  %1050 = vmatprep.subr.bf16.mxu1 %v1804_v9  ;;  %v1812_v14 = vld [vmem:[#allocation2 + $0xa0] ss:$16 sps:$4 sm:$0xff]  }
  0x22   :  { %118 = vperm.xlu1 %1794, %v56_v3   ;;  %65 = vperm.xlu0 %1793, %v56_v3   ;;  %v1810_v13 = vld [vmem:[#allocation2 + $0x2a4] ss:$16 sps:$4 sm:$0xff]   ;;  %v1813_v16 = vld [vmem:[#allocation2 + $0x2a0] ss:$16 sps:$4 sm:$0xff]   ;;  %v1894_v3 = vld [vmem:[#allocation2 + $0xec] ss:$16 sps:$4 sm:$0xff]  }
  0x23   :  { %v1814_v15 = vld [vmem:[#allocation2 + $0x84] ss:$16 sps:$4 sm:$0xff]   ;;  %v1818_v18 = vld [vmem:[#allocation2 + $0x80] ss:$16 sps:$4 sm:$0xff]   ;;  %v70_v7 = vshrl.u32 %v69_v6, 7 }
  0x24   :  { %1008 = vmatpush1.bf16.msra.mxu0 %v1806_v10  ;;  %1051 = vmatpush1.bf16.msra.mxu1 %v1807_v11  ;;  %v1816_v17 = vld [vmem:[#allocation2 + $0x284] ss:$16 sps:$4 sm:$0xff]   ;;  %v1819_v20 = vld [vmem:[#allocation2 + $0x280] ss:$16 sps:$4 sm:$0xff]  }
  0x25   :  { %1009 = vmatprep.subr.bf16.mxu0 %v1808_v12  ;;  %1052 = vmatprep.subr.bf16.mxu1 %v1810_v13  ;;  %v1820_v19 = vld [vmem:[#allocation2 + $0x64] ss:$16 sps:$4 sm:$0xff]   ;;  %v1824_v22 = vld [vmem:[#allocation2 + $0x60] ss:$16 sps:$4 sm:$0xff]   ;;  %v2124_v8 = vsub.s32 1, %v70_v7  ;;  %v2126_v9 = vsub.s32 3, %v70_v7 }
  0x26   :  { %1795 = vset.pattern.permute.xlu0 %v2070_v0  ;;  %v1822_v21 = vld [vmem:[#allocation2 + $0x264] ss:$16 sps:$4 sm:$0xff]   ;;  %v1825_v24 = vld [vmem:[#allocation2 + $0x260] ss:$16 sps:$4 sm:$0xff]   ;;  %v131_v10 = vsub.s32 5, %v70_v7  ;;  %v135_v11 = vsub.s32 7, %v70_v7 }
  0x27   :  { %v1826_v23 = vld [vmem:[#allocation2 + $0x44] ss:$16 sps:$4 sm:$0xff]   ;;  %v1830_v26 = vld [vmem:[#allocation2 + $0x40] ss:$16 sps:$4 sm:$0xff]   ;;  %v57_v12 = vld [vmem:[%s2176_s1] sm:$0xff]  ;;  %v2131_v13 = vsub.s32 0, %v70_v7 }
  0x28   :  { %1010 = vmatpush1.bf16.msra.mxu0 %v1812_v14  ;;  %1053 = vmatpush1.bf16.msra.mxu1 %v1813_v16  ;;  %v1828_v25 = vld [vmem:[#allocation2 + $0x244] ss:$16 sps:$4 sm:$0xff]   ;;  %v1831_v28 = vld [vmem:[#allocation2 + $0x240] ss:$16 sps:$4 sm:$0xff]   ;;  %v2133_v14 = vsub.s32 2, %v70_v7  ;;  %v83_v16 = vsub.s32 6, %v70_v7 }
  0x29   :  { %1011 = vmatprep.subr.bf16.mxu0 %v1814_v15  ;;  %1054 = vmatprep.subr.bf16.mxu1 %v1816_v17  ;;  %v1832_v27 = vld [vmem:[#allocation2 + $0x24] ss:$16 sps:$4 sm:$0xff]   ;;  %v1836_v30 = vld [vmem:[#allocation2 + $0x20] ss:$16 sps:$4 sm:$0xff]   ;;  %v79_v15 = vsub.s32 4, %v70_v7  ;;  %v124_v17 = vrot.slane %v57_v12, %v2124_v8 }
  0x2a   :  { %v1834_v29 = vld [vmem:[#allocation2 + $0x224] ss:$16 sps:$4 sm:$0xff]   ;;  %v1837_v32 = vld [vmem:[#allocation2 + $0x220] ss:$16 sps:$4 sm:$0xff]  }
  0x2b   :  { %v1838_v31 = vld [vmem:[#allocation2 + $0x4] ss:$16 sps:$4 sm:$0xff]   ;;  %v1842_v34 = vld [vmem:[#allocation2] ss:$16 sps:$4 sm:$0xff]  }
  0x2c   :  { %1012 = vmatpush1.bf16.msra.mxu0 %v1818_v18  ;;  %1055 = vmatpush1.bf16.msra.mxu1 %v1819_v20  ;;  %v1840_v33 = vld [vmem:[#allocation2 + $0x204] ss:$16 sps:$4 sm:$0xff]   ;;  %v1843_v36 = vld [vmem:[#allocation2 + $0x200] ss:$16 sps:$4 sm:$0xff]   ;;  %v128_v18 = vrot.slane %v57_v12, %v2126_v9  ;;  %v136_v20 = vrot.slane %v57_v12, %v135_v11 }
  0x2d   :  { %1013 = vmatprep.subr.bf16.mxu0 %v1820_v19  ;;  %1056 = vmatprep.subr.bf16.mxu1 %v1822_v21  ;;  %v1844_v35 = vld [vmem:[#allocation2 + $0x1e4] ss:$16 sps:$4 sm:$0xff]   ;;  %v1848_v38 = vld [vmem:[#allocation2 + $0x1e0] ss:$16 sps:$4 sm:$0xff]   ;;  %v132_v19 = vrot.slane %v57_v12, %v131_v10  ;;  %v72_v21 = vrot.slane %v57_v12, %v2131_v13 }
  0x2e   :  { %v1846_v37 = vld [vmem:[#allocation2 + $0x3e4] ss:$16 sps:$4 sm:$0xff]   ;;  %v1849_v40 = vld [vmem:[#allocation2 + $0x3e0] ss:$16 sps:$4 sm:$0xff]  }
  0x2f   :  { %v1850_v39 = vld [vmem:[#allocation2 + $0x1c4] ss:$16 sps:$4 sm:$0xff]   ;;  %v1854_v42 = vld [vmem:[#allocation2 + $0x1c0] ss:$16 sps:$4 sm:$0xff]  }
  0x30   :  { %1014 = vmatpush1.bf16.msra.mxu0 %v1824_v22  ;;  %1057 = vmatpush1.bf16.msra.mxu1 %v1825_v24  ;;  %v1852_v41 = vld [vmem:[#allocation2 + $0x3c4] ss:$16 sps:$4 sm:$0xff]   ;;  %v1855_v44 = vld [vmem:[#allocation2 + $0x3c0] ss:$16 sps:$4 sm:$0xff]   ;;  %v76_v22 = vrot.slane %v57_v12, %v2133_v14  ;;  %v84_v24 = vrot.slane %v57_v12, %v83_v16 }
  0x31   :  { %1015 = vmatprep.subr.bf16.mxu0 %v1826_v23  ;;  %1058 = vmatprep.subr.bf16.mxu1 %v1828_v25  ;;  %v1856_v43 = vld [vmem:[#allocation2 + $0x1a4] ss:$16 sps:$4 sm:$0xff]   ;;  %v1860_v46 = vld [vmem:[#allocation2 + $0x1a0] ss:$16 sps:$4 sm:$0xff]   ;;  %v80_v23 = vrot.slane %v57_v12, %v79_v15  ;;  %v144_v25 = vrot.slane %v124_v17, %v2124_v8 }
  0x32   :  { %v1858_v45 = vld [vmem:[#allocation2 + $0x3a4] ss:$16 sps:$4 sm:$0xff]   ;;  %v1861_v48 = vld [vmem:[#allocation2 + $0x3a0] ss:$16 sps:$4 sm:$0xff]  }
  0x33   :  { %v1862_v47 = vld [vmem:[#allocation2 + $0x184] ss:$16 sps:$4 sm:$0xff]   ;;  %v1866_v50 = vld [vmem:[#allocation2 + $0x180] ss:$16 sps:$4 sm:$0xff]  }
  0x34   :  { %1016 = vmatpush1.bf16.msra.mxu0 %v1830_v26  ;;  %1059 = vmatpush1.bf16.msra.mxu1 %v1831_v28  ;;  %v1864_v49 = vld [vmem:[#allocation2 + $0x384] ss:$16 sps:$4 sm:$0xff]   ;;  %v1867_v52 = vld [vmem:[#allocation2 + $0x380] ss:$16 sps:$4 sm:$0xff]   ;;  %v148_v26 = vrot.slane %v128_v18, %v2124_v8  ;;  %v156_v28 = vrot.slane %v136_v20, %v2124_v8 }
  0x35   :  { %1017 = vmatprep.subr.bf16.mxu0 %v1832_v27  ;;  %1060 = vmatprep.subr.bf16.mxu1 %v1834_v29  ;;  %v1868_v51 = vld [vmem:[#allocation2 + $0x164] ss:$16 sps:$4 sm:$0xff]   ;;  %v1872_v54 = vld [vmem:[#allocation2 + $0x160] ss:$16 sps:$4 sm:$0xff]   ;;  %v152_v27 = vrot.slane %v132_v19, %v2124_v8  ;;  %v92_v29 = vrot.slane %v72_v21, %v2131_v13 }
  0x36   :  { %v1870_v53 = vld [vmem:[#allocation2 + $0x364] ss:$16 sps:$4 sm:$0xff]   ;;  %v1873_v56 = vld [vmem:[#allocation2 + $0x360] ss:$16 sps:$4 sm:$0xff]  }
  0x37   :  { %v1874_v55 = vld [vmem:[#allocation2 + $0x144] ss:$16 sps:$4 sm:$0xff]   ;;  %v1878_v58 = vld [vmem:[#allocation2 + $0x140] ss:$16 sps:$4 sm:$0xff]  }
  0x38   :  { %1018 = vmatpush1.bf16.msra.mxu0 %v1836_v30  ;;  %1061 = vmatpush1.bf16.msra.mxu1 %v1837_v32  ;;  %v1876_v57 = vld [vmem:[#allocation2 + $0x344] ss:$16 sps:$4 sm:$0xff]   ;;  %v1879_v60 = vld [vmem:[#allocation2 + $0x340] ss:$16 sps:$4 sm:$0xff]   ;;  %v96_v30 = vrot.slane %v76_v22, %v2131_v13  ;;  %v104_v32 = vrot.slane %v84_v24, %v2131_v13  ;;  %v1892_v24 = vld [vmem:[#allocation2 + $0xe8] ss:$16 sps:$4 sm:$0xff]  }
  0x39   :  { %1019 = vmatprep.subr.bf16.mxu0 %v1838_v31  ;;  %1062 = vmatprep.subr.bf16.mxu1 %v1840_v33  ;;  %v1880_v59 = vld [vmem:[#allocation2 + $0x124] ss:$16 sps:$4 sm:$0xff]   ;;  %v1884_v62 = vld [vmem:[#allocation2 + $0x120] ss:$16 sps:$4 sm:$0xff]   ;;  %v100_v31 = vrot.slane %v80_v23, %v2131_v13 }
  0x3a   :  { %v1882_v61 = vld [vmem:[#allocation2 + $0x324] ss:$16 sps:$4 sm:$0xff]   ;;  %v1885_v0 = vld [vmem:[#allocation2 + $0x320] ss:$16 sps:$4 sm:$0xff]  }
  0x3b   :  { %v1886_v63 = vld [vmem:[#allocation2 + $0x104] ss:$16 sps:$4 sm:$0xff]   ;;  %v1890_v2 = vld [vmem:[#allocation2 + $0x100] ss:$16 sps:$4 sm:$0xff]  }
  0x3c   :  { %1020 = vmatpush1.bf16.msra.mxu0 %v1842_v34  ;;  %1063 = vmatpush1.bf16.msra.mxu1 %v1843_v36  ;;  %v1888_v1 = vld [vmem:[#allocation2 + $0x304] ss:$16 sps:$4 sm:$0xff]   ;;  %v1891_v4 = vld [vmem:[#allocation2 + $0x300] ss:$16 sps:$4 sm:$0xff]  }
  0x3d   :  { %1021 = vmatprep.subr.bf16.mxu0 %v1844_v35  ;;  %1064 = vmatprep.subr.bf16.mxu1 %v1846_v37  ;;  %v173_v35 = vld [vmem:[%s2177_s2] sm:$0xf] }
  0x40   :  { %1022 = vmatpush2.bf16.msra.mxu0 %v1848_v38  ;;  %1065 = vmatpush2.bf16.msra.mxu1 %v1849_v40 }
  0x41   :  { %1023 = vmatprep.subr.bf16.mxu0 %v1850_v39  ;;  %1066 = vmatprep.subr.bf16.mxu1 %v1852_v41 }
  0x44   :  { %1024 = vmatpush2.bf16.msra.mxu0 %v1854_v42  ;;  %1067 = vmatpush2.bf16.msra.mxu1 %v1855_v44  ;;  %v182_v44 = vrot.slane %v173_v35, %v2124_v8 }
  0x45   :  { %1025 = vmatprep.subr.bf16.mxu0 %v1856_v43  ;;  %1068 = vmatprep.subr.bf16.mxu1 %v1858_v45  ;;  %v190_v45 = vrot.slane %v173_v35, %v2126_v9 }
  0x48   :  { %1026 = vmatpush2.bf16.msra.mxu0 %v1860_v46  ;;  %1069 = vmatpush2.bf16.msra.mxu1 %v1861_v48  ;;  %v178_v46 = vrot.slane %v173_v35, %v2131_v13 }
  0x49   :  { %1027 = vmatprep.subr.bf16.mxu0 %v1862_v47  ;;  %1070 = vmatprep.subr.bf16.mxu1 %v1864_v49  ;;  %v186_v47 = vrot.slane %v173_v35, %v2133_v14  ;;  %v1907_v35 = vld [vmem:[#allocation2 + $0x2a8] ss:$16 sps:$4 sm:$0xff]  }
  0x4c   :  { %1028 = vmatpush2.bf16.msra.mxu0 %v1866_v50  ;;  %1071 = vmatpush2.bf16.msra.mxu1 %v1867_v52 }
  0x4d   :  { %1029 = vmatprep.subr.bf16.mxu0 %v1868_v51  ;;  %1072 = vmatprep.subr.bf16.mxu1 %v1870_v53 }
  0x50   :  { %1030 = vmatpush2.bf16.msra.mxu0 %v1872_v54  ;;  %1073 = vmatpush2.bf16.msra.mxu1 %v1873_v56 }
  0x51   :  { %1031 = vmatprep.subr.bf16.mxu0 %v1874_v55  ;;  %1074 = vmatprep.subr.bf16.mxu1 %v1876_v57 }
  0x54   :  { %1032 = vmatpush2.bf16.msra.mxu0 %v1878_v58  ;;  %1075 = vmatpush2.bf16.msra.mxu1 %v1879_v60 }
  0x55   :  { %1033 = vmatprep.subr.bf16.mxu0 %v1880_v59  ;;  %1076 = vmatprep.subr.bf16.mxu1 %v1882_v61 }
  0x58   :  { %1034 = vmatpush2.bf16.msra.mxu0 %v1884_v62  ;;  %1077 = vmatpush2.bf16.msra.mxu1 %v1885_v0 }
  0x59   :  { %1035 = vmatprep.subr.bf16.mxu0 %v1886_v63  ;;  %1078 = vmatprep.subr.bf16.mxu1 %v1888_v1 }
  0x5c   :  { %1036 = vmatpush2.bf16.msra.mxu0 %v1890_v2  ;;  %1079 = vmatpush2.bf16.msra.mxu1 %v1891_v4 }
  0x5d   :  { %1091 = vmatprep.subr.bf16.mxu0 %v1894_v3  ;;  %1134 = vmatprep.subr.bf16.mxu1 %v1897_v5 }
  0x99   :  { %v115_v33 = vpop.permute.xlu1 %114  ;;  %v61_v34 = vpop.permute.xlu0 %60 }
  0x9a   :  { %v157_v36 = vmul.f32 %v144_v25, %v115_v33  ;;  %v158_v37 = vmul.f32 %v148_v26, %v115_v33  ;;  %v159_v38 = vmul.f32 %v152_v27, %v115_v33  ;;  %v160_v39 = vmul.f32 %v156_v28, %v115_v33  ;;  %v1909_v33 = vld [vmem:[#allocation2 + $0x2ac] ss:$16 sps:$4 sm:$0xff]  }
  0x9b   :  { %v105_v40 = vmul.f32 %v92_v29, %v61_v34  ;;  %v106_v41 = vmul.f32 %v96_v30, %v61_v34  ;;  %v107_v42 = vmul.f32 %v100_v31, %v61_v34  ;;  %v108_v43 = vmul.f32 %v104_v32, %v61_v34  ;;  %v1904_v34 = vld [vmem:[#allocation2 + $0xa8] ss:$16 sps:$4 sm:$0xff]  }
  0x9d   :  { %v119_v48 = vpop.permute.xlu1 %118  ;;  %v66_v49 = vpop.permute.xlu0 %65  ;;  %v166_v50 = vadd.f32 %v158_v37, %v106_v41  ;;  %v168_v51 = vadd.f32 %v160_v39, %v108_v43  ;;  %v165_v52 = vadd.f32 %v157_v36, %v105_v40  ;;  %v167_v53 = vadd.f32 %v159_v38, %v107_v42  ;;  %v1912_v36 = vld [vmem:[#allocation2 + $0x8c] ss:$16 sps:$4 sm:$0xff]   ;;  %v1910_v38 = vld [vmem:[#allocation2 + $0x88] ss:$16 sps:$4 sm:$0xff]  }
  0x9e   :  { %v161_v54 = vmul.f32 %v144_v25, %v119_v48  ;;  %v162_v55 = vmul.f32 %v148_v26, %v119_v48  ;;  %v163_v56 = vmul.f32 %v152_v27, %v119_v48  ;;  %v164_v57 = vmul.f32 %v156_v28, %v119_v48  ;;  %v1895_v25 = vld [vmem:[#allocation2 + $0x2e8] ss:$16 sps:$4 sm:$0xff]   ;;  %v1900_v28 = vld [vmem:[#allocation2 + $0xcc] ss:$16 sps:$4 sm:$0xff]  }
  0x9f   :  { %v109_v58 = vmul.f32 %v92_v29, %v66_v49  ;;  %v110_v59 = vmul.f32 %v96_v30, %v66_v49  ;;  %v111_v60 = vmul.f32 %v100_v31, %v66_v49  ;;  %v112_v61 = vmul.f32 %v104_v32, %v66_v49  ;;  %v1903_v29 = vld [vmem:[#allocation2 + $0x2cc] ss:$16 sps:$4 sm:$0xff]   ;;  %v1898_v30 = vld [vmem:[#allocation2 + $0xc8] ss:$16 sps:$4 sm:$0xff]  }
  0xa0   :  { %v196_v62 = vadd.f32 %v182_v44, %v166_v50  ;;  %v198_v63 = vadd.f32 %v190_v45, %v168_v51  ;;  %v195_v0 = vadd.f32 %v178_v46, %v165_v52  ;;  %v197_v1 = vadd.f32 %v186_v47, %v167_v53  ;;  %v1901_v31 = vld [vmem:[#allocation2 + $0x2c8] ss:$16 sps:$4 sm:$0xff]   ;;  %v1906_v32 = vld [vmem:[#allocation2 + $0xac] ss:$16 sps:$4 sm:$0xff]  }
  0xa1   :  { %v169_v2 = vadd.f32 %v161_v54, %v109_v58  ;;  %v170_v3 = vadd.f32 %v162_v55, %v110_v59  ;;  %v171_v4 = vadd.f32 %v163_v56, %v111_v60  ;;  %v172_v5 = vadd.f32 %v164_v57, %v112_v61  ;;  %v1915_v37 = vld [vmem:[#allocation2 + $0x28c] ss:$16 sps:$4 sm:$0xff]   ;;  %v1913_v39 = vld [vmem:[#allocation2 + $0x288] ss:$16 sps:$4 sm:$0xff]  }
  0xa2   :  { %v204_v12 = vmax.f32 %v196_v62, 0.0  ;;  %v206_v15 = vmax.f32 %v198_v63, 0.0  ;;  %v203_v16 = vmax.f32 %v195_v0, 0.0  ;;  %v205_v17 = vmax.f32 %v197_v1, 0.0  ;;  %v1918_v40 = vld [vmem:[#allocation2 + $0x6c] ss:$16 sps:$4 sm:$0xff]  }
  0xa3   :  { %v200_v6 = vadd.f32 %v182_v44, %v170_v3  ;;  %v202_v7 = vadd.f32 %v190_v45, %v172_v5  ;;  %v199_v10 = vadd.f32 %v178_v46, %v169_v2  ;;  %v201_v11 = vadd.f32 %v186_v47, %v171_v4  ;;  %v1921_v41 = vld [vmem:[#allocation2 + $0x26c] ss:$16 sps:$4 sm:$0xff]   ;;  %v1916_v42 = vld [vmem:[#allocation2 + $0x68] ss:$16 sps:$4 sm:$0xff]  }
  0xa4   :  { %v1919_v43 = vld [vmem:[#allocation2 + $0x268] ss:$16 sps:$4 sm:$0xff]   ;;  %v1924_v44 = vld [vmem:[#allocation2 + $0x4c] ss:$16 sps:$4 sm:$0xff]  }
  0xa5   :  { %v208_v18 = vmax.f32 %v200_v6, 0.0  ;;  %v210_v19 = vmax.f32 %v202_v7, 0.0  ;;  %v207_v20 = vmax.f32 %v199_v10, 0.0  ;;  %v209_v21 = vmax.f32 %v201_v11, 0.0  ;;  %v1927_v45 = vld [vmem:[#allocation2 + $0x24c] ss:$16 sps:$4 sm:$0xff]  }
  0xa6   :  { %v1922_v46 = vld [vmem:[#allocation2 + $0x48] ss:$16 sps:$4 sm:$0xff]   ;;  %v1930_v48 = vld [vmem:[#allocation2 + $0x2c] ss:$16 sps:$4 sm:$0xff]  }
  0xa7   :  { %v212_v22 = vpack.c.bf16 %v208_v18, %v204_v12  ;;  %v214_v23 = vpack.c.bf16 %v210_v19, %v206_v15  ;;  %v2154_v26 = vpack.c.bf16 %v207_v20, %v203_v16  ;;  %v2156_v27 = vpack.c.bf16 %v209_v21, %v205_v17  ;;  %v1925_v47 = vld [vmem:[#allocation2 + $0x248] ss:$16 sps:$4 sm:$0xff]   ;;  %v1933_v49 = vld [vmem:[#allocation2 + $0x22c] ss:$16 sps:$4 sm:$0xff]  }
  0xa8   :  { %v1928_v50 = vld [vmem:[#allocation2 + $0x28] ss:$16 sps:$4 sm:$0xff]   ;;  %v1936_v52 = vld [vmem:[#allocation2 + $0xc] ss:$16 sps:$4 sm:$0xff]  }
  0xa9   :  { %1037 = vmatprep.mubr.bf16.mxu0 %v212_v22  ;;  %1080 = vmatprep.mubr.bf16.mxu1 %v214_v23  ;;  %v1931_v51 = vld [vmem:[#allocation2 + $0x228] ss:$16 sps:$4 sm:$0xff]   ;;  %v1939_v53 = vld [vmem:[#allocation2 + $0x20c] ss:$16 sps:$4 sm:$0xff]  }
  0xaa   :  { %1038 = vmatmul.mubr.bf16.vlgmr.msra.gmra.mxu0 %v2154_v26  ;;  %1081 = vmatmul.mubr.bf16.vlgmr.msra.gmra.mxu1 %v2156_v27  ;;  %v1934_v54 = vld [vmem:[#allocation2 + $0x8] ss:$16 sps:$4 sm:$0xff]   ;;  %v1942_v56 = vld [vmem:[#allocation2 + $0x1ec] ss:$16 sps:$4 sm:$0xff]  }
  0xab   :  { %1092 = vmatpush1.bf16.msra.mxu0 %v1892_v24  ;;  %1135 = vmatpush1.bf16.msra.mxu1 %v1895_v25  ;;  %v1937_v55 = vld [vmem:[#allocation2 + $0x208] ss:$16 sps:$4 sm:$0xff]   ;;  %v1945_v57 = vld [vmem:[#allocation2 + $0x3ec] ss:$16 sps:$4 sm:$0xff]  }
  0xac   :  { %1123 = vmatprep.mubr.bf16.mxu0 %v212_v22  ;;  %1166 = vmatprep.mubr.bf16.mxu1 %v214_v23  ;;  %v1940_v58 = vld [vmem:[#allocation2 + $0x1e8] ss:$16 sps:$4 sm:$0xff]   ;;  %v1948_v60 = vld [vmem:[#allocation2 + $0x1cc] ss:$16 sps:$4 sm:$0xff]  }
  0xad   :  { %1093 = vmatprep.subr.bf16.mxu0 %v1900_v28  ;;  %1136 = vmatprep.subr.bf16.mxu1 %v1903_v29  ;;  %v1943_v59 = vld [vmem:[#allocation2 + $0x3e8] ss:$16 sps:$4 sm:$0xff]   ;;  %v1951_v61 = vld [vmem:[#allocation2 + $0x3cc] ss:$16 sps:$4 sm:$0xff]  }
  0xae   :  { %v1946_v62 = vld [vmem:[#allocation2 + $0x1c8] ss:$16 sps:$4 sm:$0xff]   ;;  %v1954_v0 = vld [vmem:[#allocation2 + $0x1ac] ss:$16 sps:$4 sm:$0xff]  }
  0xaf   :  { %1094 = vmatpush1.bf16.msra.mxu0 %v1898_v30  ;;  %1137 = vmatpush1.bf16.msra.mxu1 %v1901_v31  ;;  %v1949_v63 = vld [vmem:[#allocation2 + $0x3c8] ss:$16 sps:$4 sm:$0xff]   ;;  %v1957_v1 = vld [vmem:[#allocation2 + $0x3ac] ss:$16 sps:$4 sm:$0xff]  }
  0xb0   :  { %1095 = vmatprep.subr.bf16.mxu0 %v1906_v32  ;;  %1138 = vmatprep.subr.bf16.mxu1 %v1909_v33  ;;  %v1952_v2 = vld [vmem:[#allocation2 + $0x1a8] ss:$16 sps:$4 sm:$0xff]   ;;  %v1960_v4 = vld [vmem:[#allocation2 + $0x18c] ss:$16 sps:$4 sm:$0xff]   ;;  %v1990_v32 = vld [vmem:[#allocation4 + $0x70] sm:$0xff]  }
  0xb1   :  { %v1955_v3 = vld [vmem:[#allocation2 + $0x3a8] ss:$16 sps:$4 sm:$0xff]   ;;  %v1963_v5 = vld [vmem:[#allocation2 + $0x38c] ss:$16 sps:$4 sm:$0xff]   ;;  %v1991_v33 = vld [vmem:[#allocation4 + $0x30] sm:$0xff]  }
  0xb2   :  { %v1958_v6 = vld [vmem:[#allocation2 + $0x188] ss:$16 sps:$4 sm:$0xff]   ;;  %v1966_v10 = vld [vmem:[#allocation2 + $0x16c] ss:$16 sps:$4 sm:$0xff]  }
  0xb3   :  { %1096 = vmatpush1.bf16.msra.mxu0 %v1904_v34  ;;  %1139 = vmatpush1.bf16.msra.mxu1 %v1907_v35  ;;  %v1961_v7 = vld [vmem:[#allocation2 + $0x388] ss:$16 sps:$4 sm:$0xff]   ;;  %v1969_v11 = vld [vmem:[#allocation2 + $0x36c] ss:$16 sps:$4 sm:$0xff]  }
  0xb4   :  { %1097 = vmatprep.subr.bf16.mxu0 %v1912_v36  ;;  %1140 = vmatprep.subr.bf16.mxu1 %v1915_v37  ;;  %v1964_v12 = vld [vmem:[#allocation2 + $0x168] ss:$16 sps:$4 sm:$0xff]   ;;  %v1972_v16 = vld [vmem:[#allocation2 + $0x14c] ss:$16 sps:$4 sm:$0xff]   ;;  %v1994_v36 = vld [vmem:[#allocation4 + $0x60] sm:$0xff]  }
  0xb5   :  { %v1967_v15 = vld [vmem:[#allocation2 + $0x368] ss:$16 sps:$4 sm:$0xff]   ;;  %v1975_v17 = vld [vmem:[#allocation2 + $0x34c] ss:$16 sps:$4 sm:$0xff]   ;;  %v1995_v37 = vld [vmem:[#allocation4 + $0x20] sm:$0xff]  }
  0xb6   :  { %v1970_v18 = vld [vmem:[#allocation2 + $0x148] ss:$16 sps:$4 sm:$0xff]   ;;  %v1978_v20 = vld [vmem:[#allocation2 + $0x12c] ss:$16 sps:$4 sm:$0xff]  }
  0xb7   :  { %1098 = vmatpush1.bf16.msra.mxu0 %v1910_v38  ;;  %1141 = vmatpush1.bf16.msra.mxu1 %v1913_v39  ;;  %v1973_v19 = vld [vmem:[#allocation2 + $0x348] ss:$16 sps:$4 sm:$0xff]   ;;  %v1981_v21 = vld [vmem:[#allocation2 + $0x32c] ss:$16 sps:$4 sm:$0xff]  }
  0xb8   :  { %1099 = vmatprep.subr.bf16.mxu0 %v1918_v40  ;;  %1142 = vmatprep.subr.bf16.mxu1 %v1921_v41  ;;  %v1976_v22 = vld [vmem:[#allocation2 + $0x128] ss:$16 sps:$4 sm:$0xff]   ;;  %v1984_v24 = vld [vmem:[#allocation2 + $0x10c] ss:$16 sps:$4 sm:$0xff]   ;;  %v1998_v40 = vld [vmem:[#allocation4 + $0x50] sm:$0xff]  }
  0xb9   :  { %v1979_v23 = vld [vmem:[#allocation2 + $0x328] ss:$16 sps:$4 sm:$0xff]   ;;  %v1987_v25 = vld [vmem:[#allocation2 + $0x30c] ss:$16 sps:$4 sm:$0xff]  }
  0xba   :  { %v1982_v28 = vld [vmem:[#allocation2 + $0x108] ss:$16 sps:$4 sm:$0xff]  }
  0xbb   :  { %1100 = vmatpush1.bf16.msra.mxu0 %v1916_v42  ;;  %1143 = vmatpush1.bf16.msra.mxu1 %v1919_v43  ;;  %v1985_v29 = vld [vmem:[#allocation2 + $0x308] ss:$16 sps:$4 sm:$0xff]   ;;  %v2006_v42 = vld [vmem:[#allocation4 + $0xf0] sm:$0xff]  }
  0xbc   :  { %1101 = vmatprep.subr.bf16.mxu0 %v1924_v44  ;;  %1144 = vmatprep.subr.bf16.mxu1 %v1927_v45  ;;  %v1988_v30 = vld [vmem:[#allocation4 + $0x78] sm:$0xff]   ;;  %v1992_v34 = vld [vmem:[#allocation4 + $0x68] sm:$0xff]   ;;  %v2007_v44 = vld [vmem:[#allocation4 + $0xb0] sm:$0xff]  }
  0xbd   :  { %v1989_v31 = vld [vmem:[#allocation4 + $0x38] sm:$0xff]   ;;  %v1993_v35 = vld [vmem:[#allocation4 + $0x28] sm:$0xff]  }
  0xbe   :  { %v1996_v38 = vld [vmem:[#allocation4 + $0x58] sm:$0xff]   ;;  %v2000_v43 = vld [vmem:[#allocation4 + $0x48] sm:$0xff]  }
  0xbf   :  { %1102 = vmatpush1.bf16.msra.mxu0 %v1922_v46  ;;  %1145 = vmatpush1.bf16.msra.mxu1 %v1925_v47  ;;  %v1997_v39 = vld [vmem:[#allocation4 + $0x18] sm:$0xff]   ;;  %v2008_v45 = vld [vmem:[#allocation4 + $0xe8] sm:$0xff]   ;;  %v2002_v47 = vld [vmem:[#allocation4 + $0x40] sm:$0xff]  }
  0xc0   :  { %1103 = vmatprep.subr.bf16.mxu0 %v1930_v48  ;;  %1146 = vmatprep.subr.bf16.mxu1 %v1933_v49  ;;  %v2004_v41 = vld [vmem:[#allocation4 + $0xf8] sm:$0xff]   ;;  %v2001_v46 = vld [vmem:[#allocation4 + $0x8] sm:$0xff]   ;;  %v2010_v49 = vld [vmem:[#allocation4 + $0xe0] sm:$0xff]  }
  0xc1   :  { %v2009_v48 = vld [vmem:[#allocation4 + $0xa8] sm:$0xff]  }
  0xc3   :  { %1104 = vmatpush1.bf16.msra.mxu0 %v1928_v50  ;;  %1147 = vmatpush1.bf16.msra.mxu1 %v1931_v51  ;;  %v2003_v50 = vld [vmem:[#allocation4] sm:$0xff]  }
  0xc4   :  { %1105 = vmatprep.subr.bf16.mxu0 %v1936_v52  ;;  %1148 = vmatprep.subr.bf16.mxu1 %v1939_v53  ;;  %v2011_v51 = vld [vmem:[#allocation4 + $0xa0] sm:$0xff]   ;;  %v2012_v52 = vld [vmem:[#allocation4 + $0xd8] sm:$0xff]  }
  0xc5   :  { %v2013_v53 = vld [vmem:[#allocation4 + $0x98] sm:$0xff]  }
  0xc7   :  { %1106 = vmatpush1.bf16.msra.mxu0 %v1934_v54  ;;  %1149 = vmatpush1.bf16.msra.mxu1 %v1937_v55  ;;  %v2014_v54 = vld [vmem:[#allocation4 + $0xd0] sm:$0xff]  }
  0xc8   :  { %1107 = vmatprep.subr.bf16.mxu0 %v1942_v56  ;;  %1150 = vmatprep.subr.bf16.mxu1 %v1945_v57  ;;  %v2015_v55 = vld [vmem:[#allocation4 + $0x90] sm:$0xff]   ;;  %v2016_v56 = vld [vmem:[#allocation4 + $0xc8] sm:$0xff]  }
  0xc9   :  { %v2017_v57 = vld [vmem:[#allocation4 + $0x88] sm:$0xff]  }
  0xcb   :  { %1108 = vmatpush2.bf16.msra.mxu0 %v1940_v58  ;;  %1151 = vmatpush2.bf16.msra.mxu1 %v1943_v59  ;;  %v2018_v58 = vld [vmem:[#allocation4 + $0xc0] sm:$0xff]  }
  0xcc   :  { %1109 = vmatprep.subr.bf16.mxu0 %v1948_v60  ;;  %1152 = vmatprep.subr.bf16.mxu1 %v1951_v61  ;;  %v2019_v59 = vld [vmem:[#allocation4 + $0x80] sm:$0xff]   ;;  %v343_v60 = vld [vmem:[%s2179_s4] sm:$0xf] }
  0xcd   :  { %v352_v61 = vrot.slane %v343_v60, %v2124_v8 }
  0xcf   :  { %1110 = vmatpush2.bf16.msra.mxu0 %v1946_v62  ;;  %1153 = vmatpush2.bf16.msra.mxu1 %v1949_v63  ;;  %v348_v62 = vrot.slane %v343_v60, %v2131_v13 }
  0xd0   :  { %1111 = vmatprep.subr.bf16.mxu0 %v1954_v0  ;;  %1154 = vmatprep.subr.bf16.mxu1 %v1957_v1 }
  0xd3   :  { %1112 = vmatpush2.bf16.msra.mxu0 %v1952_v2  ;;  %1155 = vmatpush2.bf16.msra.mxu1 %v1955_v3 }
  0xd4   :  { %1113 = vmatprep.subr.bf16.mxu0 %v1960_v4  ;;  %1156 = vmatprep.subr.bf16.mxu1 %v1963_v5 }
  0xd7   :  { %1114 = vmatpush2.bf16.msra.mxu0 %v1958_v6  ;;  %1157 = vmatpush2.bf16.msra.mxu1 %v1961_v7 }
  0xd8   :  { %1115 = vmatprep.subr.bf16.mxu0 %v1966_v10  ;;  %1158 = vmatprep.subr.bf16.mxu1 %v1969_v11 }
  0xdb   :  { %1116 = vmatpush2.bf16.msra.mxu0 %v1964_v12  ;;  %1159 = vmatpush2.bf16.msra.mxu1 %v1967_v15 }
  0xdc   :  { %1117 = vmatprep.subr.bf16.mxu0 %v1972_v16  ;;  %1160 = vmatprep.subr.bf16.mxu1 %v1975_v17 }
  0xdf   :  { %1118 = vmatpush2.bf16.msra.mxu0 %v1970_v18  ;;  %1161 = vmatpush2.bf16.msra.mxu1 %v1973_v19 }
  0xe0   :  { %1119 = vmatprep.subr.bf16.mxu0 %v1978_v20  ;;  %1162 = vmatprep.subr.bf16.mxu1 %v1981_v21 }
  0xe3   :  { %1120 = vmatpush2.bf16.msra.mxu0 %v1976_v22  ;;  %1163 = vmatpush2.bf16.msra.mxu1 %v1979_v23  ;;  %v360_v23 = vrot.slane %v343_v60, %v2126_v9 }
  0xe4   :  { %1121 = vmatprep.subr.bf16.mxu0 %v1984_v24  ;;  %1164 = vmatprep.subr.bf16.mxu1 %v1987_v25  ;;  %v356_v24 = vrot.slane %v343_v60, %v2133_v14 }
  0xe7   :  { %1122 = vmatpush2.bf16.msra.mxu0 %v1982_v28  ;;  %1165 = vmatpush2.bf16.msra.mxu1 %v1985_v29 }
  0xe8   :  { %1741 = vmatprep.subr.bf16.mxu0 %v1988_v30  ;;  %1763 = vmatprep.subr.bf16.mxu1 %v2004_v41 }
  0xea   :  { %1124 = vmatmul.mubr.bf16.vlgmr.msra.gmra.mxu0 %v2154_v26  ;;  %1167 = vmatmul.mubr.bf16.vlgmr.msra.gmra.mxu1 %v2156_v27  ;;  %v2005_v26 = vld [vmem:[#allocation4 + $0xb8] sm:$0xff]   ;;  %v1999_v27 = vld [vmem:[#allocation4 + $0x10] sm:$0xff]  }
  0xeb   :  { %1742 = vmatpush3.bf16.msra.mxu0 %v1989_v31  ;;  %1764 = vmatpush3.bf16.msra.mxu1 %v2005_v26 }
  0xec   :  { %1743 = vmatprep.subr.bf16.mxu0 %v1990_v32  ;;  %1765 = vmatprep.subr.bf16.mxu1 %v2006_v42 }
  0xef   :  { %1744 = vmatpush3.bf16.msra.mxu0 %v1991_v33  ;;  %1766 = vmatpush3.bf16.msra.mxu1 %v2007_v44 }
  0xf0   :  { %1745 = vmatprep.subr.bf16.mxu0 %v1992_v34  ;;  %1767 = vmatprep.subr.bf16.mxu1 %v2008_v45 }
  0xf3   :  { %1746 = vmatpush3.bf16.msra.mxu0 %v1993_v35  ;;  %1768 = vmatpush3.bf16.msra.mxu1 %v2009_v48 }
  0xf4   :  { %1747 = vmatprep.subr.bf16.mxu0 %v1994_v36  ;;  %1769 = vmatprep.subr.bf16.mxu1 %v2010_v49  ;;  %v1708_v49 = vld [vmem:[%s2181_s6] ss:$0 sm:$0xff] }
  0xf7   :  { %1748 = vmatpush3.bf16.msra.mxu0 %v1995_v37  ;;  %1770 = vmatpush3.bf16.msra.mxu1 %v2011_v51 }
  0xf8   :  { %1749 = vmatprep.subr.bf16.mxu0 %v1996_v38  ;;  %1771 = vmatprep.subr.bf16.mxu1 %v2012_v52 }
  0xfb   :  { %1750 = vmatpush3.bf16.msra.mxu0 %v1997_v39  ;;  %1772 = vmatpush3.bf16.msra.mxu1 %v2013_v53 }
  0xfc   :  { %1751 = vmatprep.subr.bf16.mxu0 %v1998_v40  ;;  %1773 = vmatprep.subr.bf16.mxu1 %v2014_v54 }
  0xff   :  { %1752 = vmatpush3.bf16.msra.mxu0 %v1999_v27  ;;  %1774 = vmatpush3.bf16.msra.mxu1 %v2015_v55 }
 0x100   :  { %1753 = vmatprep.subr.bf16.mxu0 %v2000_v43  ;;  %1775 = vmatprep.subr.bf16.mxu1 %v2016_v56 }
 0x103   :  { %1754 = vmatpush3.bf16.msra.mxu0 %v2001_v46  ;;  %1776 = vmatpush3.bf16.msra.mxu1 %v2017_v57 }
 0x104   :  { %1755 = vmatprep.subr.bf16.mxu0 %v2002_v47  ;;  %1777 = vmatprep.subr.bf16.mxu1 %v2018_v58 }
 0x107   :  { %1756 = vmatpush3.bf16.msra.mxu0 %v2003_v50  ;;  %1778 = vmatpush3.bf16.msra.mxu1 %v2019_v59 }
 0x16a   :  { %v1039_v63 = vpop.f32.mrf.mxu0  ;;  %v1082_v0 = vpop.f32.mrf.mxu1 }
 0x16b   :  { %v1040_v4 = vadd.f32 %v1039_v63, %v348_v62 }
 0x16c   :  { %v1041_v1 = vpop.f32.mrf.mxu0  ;;  %v1084_v2 = vpop.f32.mrf.mxu1 }
 0x16d   :  { %v1042_v3 = vadd.f32 %v1041_v1, %v352_v61  ;;  %v1083_v16 = vadd.f32 %v1082_v0, %v1040_v4 }
 0x16e   :  { %v1043_v5 = vpop.f32.mrf.mxu0  ;;  %v1086_v6 = vpop.f32.mrf.mxu1 }
 0x16f   :  { %v1044_v7 = vadd.f32 %v1043_v5, %v348_v62  ;;  %v1085_v11 = vadd.f32 %v1084_v2, %v1042_v3  ;;  %v1177_v13 = vmax.f32 %v1083_v16, 0.0 }
 0x170   :  { %v1045_v10 = vpop.f32.mrf.mxu0  ;;  %v1088_v17 = vpop.f32.mrf.mxu1 }
 0x171   :  { %v1087_v12 = vadd.f32 %v1086_v6, %v1044_v7  ;;  %v1046_v15 = vadd.f32 %v1045_v10, %v352_v61  ;;  %v1178_v8 = vmax.f32 %v1085_v11, 0.0 }
 0x173   :  { %v1089_v18 = vadd.f32 %v1088_v17, %v1046_v15  ;;  %v1181_v19 = vmax.f32 %v1087_v12, 0.0 }
 0x175   :  { %v1182_v20 = vmax.f32 %v1089_v18, 0.0  ;;  %v1185_v22 = vpack.c.bf16 %v1181_v19, %v1177_v13 }
 0x177   :  { %v1186_v21 = vpack.c.bf16 %v1182_v20, %v1178_v8 }
 0x179   :  { %1484 = vmatprep.mubr.bf16.mxu0 %v1186_v21 }
 0x17a   :  { %1485 = vmatmul.mubr.bf16.vlgmr.msra.gmra.mxu0 %v1185_v22 }
 0x1aa   :  { %v1125_v25 = vpop.f32.mrf.mxu0  ;;  %v1168_v28 = vpop.f32.mrf.mxu1 }
 0x1ab   :  { %v1126_v32 = vadd.f32 %v1125_v25, %v356_v24 }
 0x1ac   :  { %v1127_v29 = vpop.f32.mrf.mxu0  ;;  %v1170_v30 = vpop.f32.mrf.mxu1 }
 0x1ad   :  { %v1128_v31 = vadd.f32 %v1127_v29, %v360_v23  ;;  %v1169_v40 = vadd.f32 %v1168_v28, %v1126_v32 }
 0x1ae   :  { %v1129_v33 = vpop.f32.mrf.mxu0  ;;  %v1172_v34 = vpop.f32.mrf.mxu1 }
 0x1af   :  { %v1130_v35 = vadd.f32 %v1129_v33, %v356_v24  ;;  %v1171_v37 = vadd.f32 %v1170_v30, %v1128_v31  ;;  %v1179_v14 = vmax.f32 %v1169_v40, 0.0 }
 0x1b0   :  { %v1131_v36 = vpop.f32.mrf.mxu0  ;;  %v1174_v41 = vpop.f32.mrf.mxu1 }
 0x1b1   :  { %v1173_v38 = vadd.f32 %v1172_v34, %v1130_v35  ;;  %v1132_v39 = vadd.f32 %v1131_v36, %v360_v23  ;;  %v1180_v9 = vmax.f32 %v1171_v37, 0.0 }
 0x1b3   :  { %v1175_v26 = vadd.f32 %v1174_v41, %v1132_v39  ;;  %v1183_v42 = vmax.f32 %v1173_v38, 0.0 }
 0x1b5   :  { %v1184_v27 = vmax.f32 %v1175_v26, 0.0  ;;  %v1187_v44 = vpack.c.bf16 %v1183_v42, %v1179_v14 }
 0x1b7   :  { %v1188_v43 = vpack.c.bf16 %v1184_v27, %v1180_v9 }
 0x1b9   :  { %1525 = vmatprep.mubr.bf16.mxu1 %v1188_v43 }
 0x1ba   :  { %1526 = vmatmul.mubr.bf16.vlgmr.msra.gmra.mxu1 %v1187_v44 }
 0x23a   :  { %v1757_v45 = vpop.f32.mrf.mxu0 }
 0x23c   :  { %v1758_v46 = vpop.f32.mrf.mxu0 }
 0x23d   :  { %v1759_v48 = vadd.f32 %v1758_v46, %v1757_v45 }
 0x23e   :  { %v1760_v47 = vpop.f32.mrf.mxu0 }
 0x23f   :  { %v1487_v53 = vadd.f32 %v1759_v48, %v1708_v49 }
 0x240   :  { %v1761_v50 = vpop.f32.mrf.mxu0 }
 0x27a   :  { %v1779_v51 = vpop.f32.mrf.mxu1 }
 0x27c   :  { %v1780_v52 = vpop.f32.mrf.mxu1 }
 0x27d   :  { %v1781_v54 = vadd.f32 %v1780_v52, %v1779_v51 }
 0x27e   :  { %v1782_v55 = vpop.f32.mrf.mxu1 }
 0x27f   :  { %v1528_v56 = vadd.f32 %v1781_v54, %v1487_v53 }
 0x280   :  { %v1783_v57 = vpop.f32.mrf.mxu1 }
 0x281   :  { %1535 = vst.msk [vmem:[#allocation6] sm:$0xff] %vm1534_vm0, %v1528_v56 }
 0x288   :  { %v1567_v58 = vld [vmem:[#allocation6] sm:$0xff] }
 0x289   :  { %1568 = vst [vmem:[%s2182_s7] sm:$0xff] %v1567_v58 }
 0x28a   :  { %1574 = vsyncpa [#allocation3], 1 }
 0x28b   :  { %1575 = vsyncpa [#allocation5], 1 }

</bundles_post_ra>
